<compile_context>
chip_gen: v7x
topology: tpu7x:2x2x1
jax: 0.10.0
libtpu: 0.0.40
codegen_flags: <defaults>
</compile_context>

<pallas_src>
import jax
import jax.numpy as jnp
from jax.experimental import pallas as pl
from jax.experimental.pallas import tpu as pltpu

_LANE = 1024                   # preferred lane width: 8*128 -> unmasked wide vst, wide DMA
_TARGET_BLOCK_BYTES = 4 << 20  # ~4 MiB blocks: 2 bufs x (in+out) = 16 MiB live VMEM
_VMEM_LIMIT_BYTES = 32 << 20   # above v5e's 16 MiB scoped default, <= physical everywhere
_SUBLANE_ALIGN = 32            # covers f32(8) / bf16(16) / int8,fp8(32) sublane packing


def _relu_kernel(x_ref, o_ref):
    # Pure VPU elementwise hot path on the whole VMEM tile; hidden under DMA stream.
    o_ref[...] = jnp.maximum(x_ref[...], 0)


def _pick_block_rows(rows, lane, itemsize):
    """Dtype-aware block sizing + megacore-friendly split for small row counts."""
    tile_rows = (_TARGET_BLOCK_BYTES // (lane * itemsize)) // _SUBLANE_ALIGN * _SUBLANE_ALIGN
    tile_rows = max(_SUBLANE_ALIGN, tile_rows)
    if rows > tile_rows:
        return tile_rows
    # Small/medium tensors: keep the "parallel" grid axis length >= 2 when possible so
    # v7x's two TensorCores both get work (no effect on single-TC v5e/v6e).
    if rows >= 2 * _SUBLANE_ALIGN:
        half = -(-rows // 2)                                   # cdiv(rows, 2)
        half = -(-half // _SUBLANE_ALIGN) * _SUBLANE_ALIGN     # round up to 32 sublanes
        if half < rows:
            return half
    return rows  # block dim == full array dim is always legal


def _relu_2d(x2d):
    """Tiled elementwise ReLU over a (rows, lane) slab with lane % 128 == 0."""
    rows, lane = x2d.shape
    block_rows = _pick_block_rows(rows, lane, x2d.dtype.itemsize)
    grid = (pl.cdiv(rows, block_rows),)
    return pl.pallas_call(
        _relu_kernel,
        out_shape=jax.ShapeDtypeStruct(x2d.shape, x2d.dtype),
        grid_spec=pltpu.PrefetchScalarGridSpec(
            num_scalar_prefetch=0,
            grid=grid,
            in_specs=[pl.BlockSpec((block_rows, lane), lambda i: (i, 0))],
            out_specs=pl.BlockSpec((block_rows, lane), lambda i: (i, 0)),
        ),
        compiler_params=pltpu.CompilerParams(
            dimension_semantics=("parallel",),      # megacore: split grid across TCs (v7x)
            vmem_limit_bytes=_VMEM_LIMIT_BYTES,
        ),
        cost_estimate=pl.CostEstimate(
            flops=rows * lane,
            transcendentals=0,
            bytes_accessed=2 * x2d.dtype.itemsize * rows * lane,  # one read + one write
        ),
    )(x2d)


@jax.jit
def custom_relu(x):
    """Forward pass of CustomReluModule: elementwise max(x, 0), any shape/dtype."""
    orig_shape = x.shape
    total = x.size
    if total == 0:
        return x

    # Fast path 1: total divisible by the preferred lane width -> free contiguous
    # reinterpretation as (rows, 1024). No pad, no extra HBM traffic.
    if total % _LANE == 0:
        out = _relu_2d(x.reshape(total // _LANE, _LANE))
        return out.reshape(orig_shape)

    # Fast path 2: natural last dim is already lane-aligned (multiple of 128) and
    # small enough that one row strip fits the target block -> collapse leading dims.
    last = x.shape[-1] if x.ndim else 1
    if x.ndim >= 2 and last % 128 == 0 and last * x.dtype.itemsize <= _TARGET_BLOCK_BYTES:
        out = _relu_2d(x.reshape(total // last, last))
        return out.reshape(orig_shape)

    # Ragged fallback: kernel the aligned bulk, handle the short tail with plain jnp.
    # This avoids the old pad + slice path that re-streamed the whole tensor twice more.
    flat = x.reshape(-1)
    bulk = (total // _LANE) * _LANE
    if bulk == 0:
        # Tiny tensor (< 1024 elements): kernel launch overhead is not worth it.
        return jnp.maximum(x, 0)
    head = _relu_2d(flat[:bulk].reshape(bulk // _LANE, _LANE)).reshape(-1)
    tail = jnp.maximum(flat[bulk:], 0)
    return jnp.concatenate([head, tail]).reshape(orig_shape)


if __name__ == "__main__":
    # Deterministic example input, NCHW like the PyTorch module would receive.
    key = jax.random.PRNGKey(0)
    x = jax.random.normal(key, (2, 4, 16, 16), dtype=jnp.float32)

    out = jax.block_until_ready(custom_relu(x))
    ref = jnp.maximum(x, 0.0)
    assert out.shape == x.shape and out.dtype == x.dtype
    assert bool(jnp.allclose(out, ref)), "mismatch vs reference ReLU"

    # Ragged shape: exercises the bulk-kernel + jnp-tail fallback path.
    x2 = jax.random.normal(jax.random.PRNGKey(1), (3, 5, 7, 11), dtype=jnp.float32)
    out2 = jax.block_until_ready(custom_relu(x2))
    assert bool(jnp.allclose(out2, jnp.maximum(x2, 0.0))), "mismatch on ragged path"

    # Natural-last-dim path (last % 128 == 0, total % 1024 != 0) + bf16 dtype-aware blocks.
    x3 = jax.random.normal(jax.random.PRNGKey(2), (5, 384), dtype=jnp.bfloat16)
    out3 = jax.block_until_ready(custom_relu(x3))
    assert bool(jnp.allclose(out3, jnp.maximum(x3, 0))), "mismatch on bf16 path"

    print("KERNEL_OK")
</pallas_src>

<mosaic_0001>
module attributes {stable_mosaic.version = 11 : i64} {
  func.func @_relu_kernel(%arg0: i32, %arg1: memref<2x1024xf32, #tpu.memory_space<vmem>>, %arg2: memref<2x1024xf32, #tpu.memory_space<vmem>>) attributes {dimension_semantics = [#tpu.dimension_semantics<parallel>], iteration_bounds = array<i64: 1>, scalar_prefetch = 0 : i64, scratch_operands = 0 : i64, tpu.core_type = #tpu.core_type<tc>, window_params = [{transform_indices = @transform_0, window_bounds = array<i64: 2, 1024>}, {transform_indices = @transform_1, window_bounds = array<i64: 2, 1024>}]} {
    %c0 = arith.constant 0 : index
    %c0_0 = arith.constant 0 : index
    %0 = vector.load %arg1[%c0, %c0_0] : memref<2x1024xf32, #tpu.memory_space<vmem>>, vector<2x1024xf32>
    %cst = arith.constant 0.000000e+00 : f32
    %1 = vector.broadcast %cst : f32 to vector<2x1024xf32>
    %2 = arith.maximumf %0, %1 : vector<2x1024xf32>
    %c0_1 = arith.constant 0 : index
    %c0_2 = arith.constant 0 : index
    %3 = vector.load %arg2[%c0_1, %c0_2] : memref<2x1024xf32, #tpu.memory_space<vmem>>, vector<2x1024xf32>
    tpu.vector_store %arg2[%c0_1, %c0_2], %2 {strides = array<i32>} : memref<2x1024xf32, #tpu.memory_space<vmem>>, vector<2x1024xf32>,
    return
  }
  func.func @transform_0(%arg0: i32) -> (i32, i32) {
    %c0_i32 = arith.constant 0 : i32
    %c0_i32_0 = arith.constant 0 : i32
    return %arg0, %c0_i32 : i32, i32
  }
  func.func @transform_1(%arg0: i32) -> (i32, i32) {
    %c0_i32 = arith.constant 0 : i32
    %c0_i32_0 = arith.constant 0 : i32
    return %arg0, %c0_i32 : i32, i32
  }
}

</mosaic_0001>

<bundles_post_ra>
// kernel: custom_relu.1
= control target key start
LH: loop header
LB: loop body
LE: loop exit
PB: predicated region body
PF: predicated region fallthrough
CT: control target
= control target key end

     0   :  { %s40_s0 = inlined_call_operand.vmem [shape: f32[2,1024], index: 0, kind: input, shape index: {}]   ;;  %s41_s1 = inlined_call_operand.vmem [shape: f32[2,1024], index: 1, kind: output, shape index: {}]  }
   0x1   :  { %v8_v0 = vld [vmem:[%s40_s0] sm:$0xff]  ;;  %v9_v1 = vld [vmem:[%s40_s0 + $0x8] sm:$0xff] }
   0x2   :  { %v10_v2 = vmax.f32 %v8_v0, 0.0  ;;  %v11_v3 = vmax.f32 %v9_v1, 0.0 }
   0x4   :  { %12 = vst [vmem:[%s41_s1] sm:$0xff] %v10_v2  ;;  %13 = vst [vmem:[%s41_s1 + $0x8] sm:$0xff] %v11_v3 }

</bundles_post_ra>
